<compile_context>
chip_gen: v5e
topology: v5e:2x2
jax: 0.10.0
libtpu: 0.0.40
codegen_flags: <defaults>
</compile_context>

<pallas_src>
import functools

import jax
import jax.numpy as jnp
from jax.experimental import pallas as pl
from jax.experimental.pallas import tpu as pltpu


def _round_up(x, m):
    return (x + m - 1) // m * m


def _encoder_kernel(x_ref, wemb_ref, bemb_ref, wih_ref, whh_ref, b_ref,
                    out_ref, *, seq_len, batch_p, hidden):
    S, BP, H = seq_len, batch_p, hidden

    # ---- Non-recurrent part, hoisted out of the time loop -----------------
    # emb       = ReLU(x @ W_emb^T + b_emb)              (S*BP, H)
    # gates_pre = emb @ W_ih^T + (b_ih + b_hh)           (S*BP, 4H)
    # (g-gate columns of W_ih^T and the bias were pre-scaled by 2 in the
    #  wrapper; see single-sigmoid trick below.)
    x_all = x_ref[...]                                        # (S*BP, F) bf16
    emb = jnp.dot(x_all, wemb_ref[...],
                  preferred_element_type=jnp.float32) + bemb_ref[...]
    emb = jnp.maximum(emb, 0.0)                               # (S*BP, H) f32
    gates_pre = (jnp.dot(emb.astype(wih_ref.dtype), wih_ref[...],
                         preferred_element_type=jnp.float32)
                 + b_ref[...])                                # (S*BP, 4H) f32, vreg-resident

    # ---- Serial recurrence, fully VMEM/register resident -------------------
    w_hh = whh_ref[...]                                       # (H, 4H) f32 (g cols pre-scaled x2)
    h = jnp.zeros((BP, H), jnp.float32)
    c = jnp.zeros((BP, H), jnp.float32)
    hs = []

    # S is small and static -> fully unrolled loop; every slice below is static.
    for t in range(S):
        gates = (gates_pre[t * BP:(t + 1) * BP, :]
                 + jnp.dot(h, w_hh, preferred_element_type=jnp.float32))  # (BP, 4H)

        # Single EUP pass over the full (BP, 4H) vreg; tanh on the g lanes is
        # recovered from the pre-scaled pre-activation: tanh(x) = 2*sigmoid(2x) - 1.
        sg = jax.nn.sigmoid(gates)
        i_g = sg[:, 0 * H:1 * H]
        f_g = sg[:, 1 * H:2 * H]
        g_g = 2.0 * sg[:, 2 * H:3 * H] - 1.0
        o_g = sg[:, 3 * H:4 * H]

        c = f_g * c + i_g * g_g
        h = o_g * jnp.tanh(c)
        hs.append(h)

    # One lane-dense store: (BP, S*H) = (8, 256) -> unmasked vst, single writeback.
    out_ref[...] = jnp.concatenate(hs, axis=1).astype(out_ref.dtype)


def encoder_forward(x, params):
    """x: (B, S, F) float32, like the PyTorch module's input.
    Returns (outputs (S, B, H), hidden (B, H)) — same as the torch module."""
    B, S, F = x.shape
    H = params["w_emb"].shape[0]
    BP = _round_up(B, 8)                                      # pad batch to sublane width

    # Glue (layout only): NBF -> time-major, pad batch, flatten (S, BP) so the
    # non-recurrent matmuls become one big MXU-friendly op.
    x_sbf = jnp.transpose(x, (1, 0, 2)).astype(jnp.float32)   # (S, B, F)
    x_pad = jnp.pad(x_sbf, ((0, 0), (0, BP - B), (0, 0)))     # (S, BP, F)
    x_flat = x_pad.reshape(S * BP, F).astype(jnp.bfloat16)    # (S*BP, F)

    # Pre-scale the g-gate column block (PyTorch gate order i,f,g,o -> columns
    # 2H:3H) by 2 so the kernel needs only one sigmoid pass per step. Exact
    # (power of 2), applied before any bf16 cast.
    g_scale = jnp.concatenate([jnp.ones((2 * H,), jnp.float32),
                               2.0 * jnp.ones((H,), jnp.float32),
                               jnp.ones((H,), jnp.float32)])              # (4H,)

    w_emb_t = params["w_emb"].T.astype(jnp.bfloat16)                      # (F, H)
    b_emb = params["b_emb"].reshape(1, H).astype(jnp.float32)
    w_ih_t = (params["w_ih"].T * g_scale[None, :]).astype(jnp.bfloat16)   # (H, 4H)
    # Recurrent weight kept f32: keeps bf16 error out of the h->h chain.
    w_hh_t = (params["w_hh"].T * g_scale[None, :]).astype(jnp.float32)    # (H, 4H)
    b_lstm = ((params["b_ih"] + params["b_hh"]) * g_scale
              ).reshape(1, 4 * H).astype(jnp.float32)

    vmem = pl.BlockSpec(memory_space=pltpu.MemorySpace.VMEM)  # whole array, VMEM resident

    out_flat = pl.pallas_call(
        functools.partial(_encoder_kernel, seq_len=S, batch_p=BP, hidden=H),
        out_shape=jax.ShapeDtypeStruct((BP, S * H), jnp.float32),
        in_specs=[vmem, vmem, vmem, vmem, vmem, vmem],
        out_specs=vmem,
    )(x_flat, w_emb_t, b_emb, w_ih_t, w_hh_t, b_lstm)

    # (BP, S*H) -> (BP, S, H) -> (S, B, H); hidden == h_S for a 1-layer LSTM.
    outputs = jnp.transpose(out_flat.reshape(BP, S, H), (1, 0, 2))[:, :B, :]
    hidden = outputs[-1]                                      # (B, H)
    return outputs, hidden


def _reference_forward(x, params):
    """Pure-JAX f32 reference matching torch semantics, for correctness check."""
    H = params["w_emb"].shape[0]
    x_sbf = jnp.transpose(x, (1, 0, 2))
    emb = jax.nn.relu(x_sbf @ params["w_emb"].T + params["b_emb"])   # (S, B, H)

    def step(carry, e_t):
        h, c = carry
        gates = e_t @ params["w_ih"].T + params["b_ih"] + h @ params["w_hh"].T + params["b_hh"]
        i = jax.nn.sigmoid(gates[:, 0 * H:1 * H])
        f = jax.nn.sigmoid(gates[:, 1 * H:2 * H])
        g = jnp.tanh(gates[:, 2 * H:3 * H])
        o = jax.nn.sigmoid(gates[:, 3 * H:4 * H])
        c = f * c + i * g
        h = o * jnp.tanh(c)
        return (h, c), h

    B = x.shape[0]
    (h, _), outs = jax.lax.scan(step, (jnp.zeros((B, H)), jnp.zeros((B, H))), emb)
    return outs, h


if __name__ == "__main__":
    # Small shapes consistent with the module: batch=2, seq=8, feature_dim=16,
    # embedding_dim=32.
    B, S, F, H = 2, 8, 16, 32

    key = jax.random.PRNGKey(0)
    k = jax.random.split(key, 7)
    scale = 0.1
    params = {
        "w_emb": scale * jax.random.normal(k[0], (H, F), jnp.float32),
        "b_emb": scale * jax.random.normal(k[1], (H,), jnp.float32),
        "w_ih":  scale * jax.random.normal(k[2], (4 * H, H), jnp.float32),
        "w_hh":  scale * jax.random.normal(k[3], (4 * H, H), jnp.float32),
        "b_ih":  scale * jax.random.normal(k[4], (4 * H,), jnp.float32),
        "b_hh":  scale * jax.random.normal(k[5], (4 * H,), jnp.float32),
    }
    x = jax.random.normal(k[6], (B, S, F), jnp.float32)

    fwd = jax.jit(encoder_forward)
    outputs, hidden = fwd(x, params)
    jax.block_until_ready((outputs, hidden))

    ref_out, ref_hid = _reference_forward(x, params)
    assert outputs.shape == (S, B, H) and hidden.shape == (B, H)
    # Tolerance sized for bf16 non-recurrent matmul operands (f32 accumulation,
    # f32 recurrence) vs f32 reference.
    assert jnp.allclose(outputs, ref_out, atol=3e-2, rtol=3e-2)
    assert jnp.allclose(hidden, ref_hid, atol=3e-2, rtol=3e-2)

    print("KERNEL_OK")
</pallas_src>

<mosaic_0001>
module attributes {stable_mosaic.version = 11 : i64} {
  func.func @_encoder_kernel(%arg0: memref<64x16xbf16, #tpu.memory_space<vmem>>, %arg1: memref<16x32xbf16, #tpu.memory_space<vmem>>, %arg2: memref<1x32xf32, #tpu.memory_space<vmem>>, %arg3: memref<32x128xbf16, #tpu.memory_space<vmem>>, %arg4: memref<32x128xf32, #tpu.memory_space<vmem>>, %arg5: memref<1x128xf32, #tpu.memory_space<vmem>>, %arg6: memref<8x256xf32, #tpu.memory_space<vmem>>) attributes {dimension_semantics = [], scalar_prefetch = 0 : i64, scratch_operands = 0 : i64, tpu.core_type = #tpu.core_type<tc>} {
    %c0 = arith.constant 0 : index
    %c0_0 = arith.constant 0 : index
    %0 = vector.load %arg0[%c0, %c0_0] : memref<64x16xbf16, #tpu.memory_space<vmem>>, vector<64x16xbf16>
    %c0_1 = arith.constant 0 : index
    %c0_2 = arith.constant 0 : index
    %1 = vector.load %arg1[%c0_1, %c0_2] : memref<16x32xbf16, #tpu.memory_space<vmem>>, vector<16x32xbf16>
    %cst = arith.constant dense<0.000000e+00> : vector<64x32xf32>
    %2 = tpu.matmul %0, %1, %cst {dimension_numbers = #tpu.dot_dimension_numbers<[1], [0], [0], [1], [0, 0, 1, 1], [], []>} : vector<64x16xbf16>, vector<16x32xbf16>, vector<64x32xf32> -> vector<64x32xf32>
    %c0_3 = arith.constant 0 : index
    %c0_4 = arith.constant 0 : index
    %3 = vector.load %arg2[%c0_3, %c0_4] : memref<1x32xf32, #tpu.memory_space<vmem>>, vector<1x32xf32>
    %4 = vector.broadcast %3 : vector<1x32xf32> to vector<64x32xf32>
    %5 = arith.addf %2, %4 : vector<64x32xf32>
    %cst_5 = arith.constant 0.000000e+00 : f32
    %6 = vector.broadcast %cst_5 : f32 to vector<64x32xf32>
    %7 = arith.maximumf %5, %6 : vector<64x32xf32>
    %8 = arith.truncf %7 : vector<64x32xf32> to vector<64x32xbf16>
    %c0_6 = arith.constant 0 : index
    %c0_7 = arith.constant 0 : index
    %9 = vector.load %arg3[%c0_6, %c0_7] : memref<32x128xbf16, #tpu.memory_space<vmem>>, vector<32x128xbf16>
    %cst_8 = arith.constant dense<0.000000e+00> : vector<64x128xf32>
    %10 = tpu.matmul %8, %9, %cst_8 {dimension_numbers = #tpu.dot_dimension_numbers<[1], [0], [0], [1], [0, 0, 1, 1], [], []>} : vector<64x32xbf16>, vector<32x128xbf16>, vector<64x128xf32> -> vector<64x128xf32>
    %c0_9 = arith.constant 0 : index
    %c0_10 = arith.constant 0 : index
    %11 = vector.load %arg5[%c0_9, %c0_10] : memref<1x128xf32, #tpu.memory_space<vmem>>, vector<1x128xf32>
    %12 = vector.broadcast %11 : vector<1x128xf32> to vector<64x128xf32>
    %13 = arith.addf %10, %12 : vector<64x128xf32>
    %c0_11 = arith.constant 0 : index
    %c0_12 = arith.constant 0 : index
    %14 = vector.load %arg4[%c0_11, %c0_12] : memref<32x128xf32, #tpu.memory_space<vmem>>, vector<32x128xf32>
    %cst_13 = arith.constant 0.000000e+00 : f32
    %15 = vector.broadcast %cst_13 : f32 to vector<8x32xf32>
    %cst_14 = arith.constant 0.000000e+00 : f32
    %16 = vector.broadcast %cst_14 : f32 to vector<8x32xf32>
    %17 = vector.extract_strided_slice %13 {offsets = [0, 0], sizes = [8, 128], strides = [1, 1]} : vector<64x128xf32> to vector<8x128xf32>
    %cst_15 = arith.constant dense<0.000000e+00> : vector<8x128xf32>
    %18 = tpu.matmul %15, %14, %cst_15 {dimension_numbers = #tpu.dot_dimension_numbers<[1], [0], [0], [1], [0, 0, 1, 1], [], []>} : vector<8x32xf32>, vector<32x128xf32>, vector<8x128xf32> -> vector<8x128xf32>
    %19 = arith.addf %17, %18 : vector<8x128xf32>
    %20 = arith.negf %19 : vector<8x128xf32>
    %21 = math.exp %20 : vector<8x128xf32>
    %cst_16 = arith.constant 1.000000e+00 : f32
    %22 = vector.broadcast %cst_16 : f32 to vector<8x128xf32>
    %23 = arith.addf %22, %21 : vector<8x128xf32>
    %24 = arith.divf %22, %23 : vector<8x128xf32>
    %25 = vector.extract_strided_slice %24 {offsets = [0, 0], sizes = [8, 32], strides = [1, 1]} : vector<8x128xf32> to vector<8x32xf32>
    %26 = vector.extract_strided_slice %24 {offsets = [0, 32], sizes = [8, 32], strides = [1, 1]} : vector<8x128xf32> to vector<8x32xf32>
    %27 = vector.extract_strided_slice %24 {offsets = [0, 64], sizes = [8, 32], strides = [1, 1]} : vector<8x128xf32> to vector<8x32xf32>
    %cst_17 = arith.constant 2.000000e+00 : f32
    %28 = vector.broadcast %cst_17 : f32 to vector<8x32xf32>
    %29 = arith.mulf %28, %27 : vector<8x32xf32>
    %cst_18 = arith.constant 1.000000e+00 : f32
    %30 = vector.broadcast %cst_18 : f32 to vector<8x32xf32>
    %31 = arith.subf %29, %30 : vector<8x32xf32>
    %32 = vector.extract_strided_slice %24 {offsets = [0, 96], sizes = [8, 32], strides = [1, 1]} : vector<8x128xf32> to vector<8x32xf32>
    %33 = arith.mulf %26, %16 : vector<8x32xf32>
    %34 = arith.mulf %25, %31 : vector<8x32xf32>
    %35 = arith.addf %33, %34 : vector<8x32xf32>
    %36 = math.tanh %35 : vector<8x32xf32>
    %37 = arith.mulf %32, %36 : vector<8x32xf32>
    %38 = vector.extract_strided_slice %13 {offsets = [8, 0], sizes = [8, 128], strides = [1, 1]} : vector<64x128xf32> to vector<8x128xf32>
    %cst_19 = arith.constant dense<0.000000e+00> : vector<8x128xf32>
    %39 = tpu.matmul %37, %14, %cst_19 {dimension_numbers = #tpu.dot_dimension_numbers<[1], [0], [0], [1], [0, 0, 1, 1], [], []>} : vector<8x32xf32>, vector<32x128xf32>, vector<8x128xf32> -> vector<8x128xf32>
    %40 = arith.addf %38, %39 : vector<8x128xf32>
    %41 = arith.negf %40 : vector<8x128xf32>
    %42 = math.exp %41 : vector<8x128xf32>
    %cst_20 = arith.constant 1.000000e+00 : f32
    %43 = vector.broadcast %cst_20 : f32 to vector<8x128xf32>
    %44 = arith.addf %43, %42 : vector<8x128xf32>
    %45 = arith.divf %43, %44 : vector<8x128xf32>
    %46 = vector.extract_strided_slice %45 {offsets = [0, 0], sizes = [8, 32], strides = [1, 1]} : vector<8x128xf32> to vector<8x32xf32>
    %47 = vector.extract_strided_slice %45 {offsets = [0, 32], sizes = [8, 32], strides = [1, 1]} : vector<8x128xf32> to vector<8x32xf32>
    %48 = vector.extract_strided_slice %45 {offsets = [0, 64], sizes = [8, 32], strides = [1, 1]} : vector<8x128xf32> to vector<8x32xf32>
    %cst_21 = arith.constant 2.000000e+00 : f32
    %49 = vector.broadcast %cst_21 : f32 to vector<8x32xf32>
    %50 = arith.mulf %49, %48 : vector<8x32xf32>
    %cst_22 = arith.constant 1.000000e+00 : f32
    %51 = vector.broadcast %cst_22 : f32 to vector<8x32xf32>
    %52 = arith.subf %50, %51 : vector<8x32xf32>
    %53 = vector.extract_strided_slice %45 {offsets = [0, 96], sizes = [8, 32], strides = [1, 1]} : vector<8x128xf32> to vector<8x32xf32>
    %54 = arith.mulf %47, %35 : vector<8x32xf32>
    %55 = arith.mulf %46, %52 : vector<8x32xf32>
    %56 = arith.addf %54, %55 : vector<8x32xf32>
    %57 = math.tanh %56 : vector<8x32xf32>
    %58 = arith.mulf %53, %57 : vector<8x32xf32>
    %59 = vector.extract_strided_slice %13 {offsets = [16, 0], sizes = [8, 128], strides = [1, 1]} : vector<64x128xf32> to vector<8x128xf32>
    %cst_23 = arith.constant dense<0.000000e+00> : vector<8x128xf32>
    %60 = tpu.matmul %58, %14, %cst_23 {dimension_numbers = #tpu.dot_dimension_numbers<[1], [0], [0], [1], [0, 0, 1, 1], [], []>} : vector<8x32xf32>, vector<32x128xf32>, vector<8x128xf32> -> vector<8x128xf32>
    %61 = arith.addf %59, %60 : vector<8x128xf32>
    %62 = arith.negf %61 : vector<8x128xf32>
    %63 = math.exp %62 : vector<8x128xf32>
    %cst_24 = arith.constant 1.000000e+00 : f32
    %64 = vector.broadcast %cst_24 : f32 to vector<8x128xf32>
    %65 = arith.addf %64, %63 : vector<8x128xf32>
    %66 = arith.divf %64, %65 : vector<8x128xf32>
    %67 = vector.extract_strided_slice %66 {offsets = [0, 0], sizes = [8, 32], strides = [1, 1]} : vector<8x128xf32> to vector<8x32xf32>
    %68 = vector.extract_strided_slice %66 {offsets = [0, 32], sizes = [8, 32], strides = [1, 1]} : vector<8x128xf32> to vector<8x32xf32>
    %69 = vector.extract_strided_slice %66 {offsets = [0, 64], sizes = [8, 32], strides = [1, 1]} : vector<8x128xf32> to vector<8x32xf32>
    %cst_25 = arith.constant 2.000000e+00 : f32
    %70 = vector.broadcast %cst_25 : f32 to vector<8x32xf32>
    %71 = arith.mulf %70, %69 : vector<8x32xf32>
    %cst_26 = arith.constant 1.000000e+00 : f32
    %72 = vector.broadcast %cst_26 : f32 to vector<8x32xf32>
    %73 = arith.subf %71, %72 : vector<8x32xf32>
    %74 = vector.extract_strided_slice %66 {offsets = [0, 96], sizes = [8, 32], strides = [1, 1]} : vector<8x128xf32> to vector<8x32xf32>
    %75 = arith.mulf %68, %56 : vector<8x32xf32>
    %76 = arith.mulf %67, %73 : vector<8x32xf32>
    %77 = arith.addf %75, %76 : vector<8x32xf32>
    %78 = math.tanh %77 : vector<8x32xf32>
    %79 = arith.mulf %74, %78 : vector<8x32xf32>
    %80 = vector.extract_strided_slice %13 {offsets = [24, 0], sizes = [8, 128], strides = [1, 1]} : vector<64x128xf32> to vector<8x128xf32>
    %cst_27 = arith.constant dense<0.000000e+00> : vector<8x128xf32>
    %81 = tpu.matmul %79, %14, %cst_27 {dimension_numbers = #tpu.dot_dimension_numbers<[1], [0], [0], [1], [0, 0, 1, 1], [], []>} : vector<8x32xf32>, vector<32x128xf32>, vector<8x128xf32> -> vector<8x128xf32>
    %82 = arith.addf %80, %81 : vector<8x128xf32>
    %83 = arith.negf %82 : vector<8x128xf32>
    %84 = math.exp %83 : vector<8x128xf32>
    %cst_28 = arith.constant 1.000000e+00 : f32
    %85 = vector.broadcast %cst_28 : f32 to vector<8x128xf32>
    %86 = arith.addf %85, %84 : vector<8x128xf32>
    %87 = arith.divf %85, %86 : vector<8x128xf32>
    %88 = vector.extract_strided_slice %87 {offsets = [0, 0], sizes = [8, 32], strides = [1, 1]} : vector<8x128xf32> to vector<8x32xf32>
    %89 = vector.extract_strided_slice %87 {offsets = [0, 32], sizes = [8, 32], strides = [1, 1]} : vector<8x128xf32> to vector<8x32xf32>
    %90 = vector.extract_strided_slice %87 {offsets = [0, 64], sizes = [8, 32], strides = [1, 1]} : vector<8x128xf32> to vector<8x32xf32>
    %cst_29 = arith.constant 2.000000e+00 : f32
    %91 = vector.broadcast %cst_29 : f32 to vector<8x32xf32>
    %92 = arith.mulf %91, %90 : vector<8x32xf32>
    %cst_30 = arith.constant 1.000000e+00 : f32
    %93 = vector.broadcast %cst_30 : f32 to vector<8x32xf32>
    %94 = arith.subf %92, %93 : vector<8x32xf32>
    %95 = vector.extract_strided_slice %87 {offsets = [0, 96], sizes = [8, 32], strides = [1, 1]} : vector<8x128xf32> to vector<8x32xf32>
    %96 = arith.mulf %89, %77 : vector<8x32xf32>
    %97 = arith.mulf %88, %94 : vector<8x32xf32>
    %98 = arith.addf %96, %97 : vector<8x32xf32>
    %99 = math.tanh %98 : vector<8x32xf32>
    %100 = arith.mulf %95, %99 : vector<8x32xf32>
    %101 = vector.extract_strided_slice %13 {offsets = [32, 0], sizes = [8, 128], strides = [1, 1]} : vector<64x128xf32> to vector<8x128xf32>
    %cst_31 = arith.constant dense<0.000000e+00> : vector<8x128xf32>
    %102 = tpu.matmul %100, %14, %cst_31 {dimension_numbers = #tpu.dot_dimension_numbers<[1], [0], [0], [1], [0, 0, 1, 1], [], []>} : vector<8x32xf32>, vector<32x128xf32>, vector<8x128xf32> -> vector<8x128xf32>
    %103 = arith.addf %101, %102 : vector<8x128xf32>
    %104 = arith.negf %103 : vector<8x128xf32>
    %105 = math.exp %104 : vector<8x128xf32>
    %cst_32 = arith.constant 1.000000e+00 : f32
    %106 = vector.broadcast %cst_32 : f32 to vector<8x128xf32>
    %107 = arith.addf %106, %105 : vector<8x128xf32>
    %108 = arith.divf %106, %107 : vector<8x128xf32>
    %109 = vector.extract_strided_slice %108 {offsets = [0, 0], sizes = [8, 32], strides = [1, 1]} : vector<8x128xf32> to vector<8x32xf32>
    %110 = vector.extract_strided_slice %108 {offsets = [0, 32], sizes = [8, 32], strides = [1, 1]} : vector<8x128xf32> to vector<8x32xf32>
    %111 = vector.extract_strided_slice %108 {offsets = [0, 64], sizes = [8, 32], strides = [1, 1]} : vector<8x128xf32> to vector<8x32xf32>
    %cst_33 = arith.constant 2.000000e+00 : f32
    %112 = vector.broadcast %cst_33 : f32 to vector<8x32xf32>
    %113 = arith.mulf %112, %111 : vector<8x32xf32>
    %cst_34 = arith.constant 1.000000e+00 : f32
    %114 = vector.broadcast %cst_34 : f32 to vector<8x32xf32>
    %115 = arith.subf %113, %114 : vector<8x32xf32>
    %116 = vector.extract_strided_slice %108 {offsets = [0, 96], sizes = [8, 32], strides = [1, 1]} : vector<8x128xf32> to vector<8x32xf32>
    %117 = arith.mulf %110, %98 : vector<8x32xf32>
    %118 = arith.mulf %109, %115 : vector<8x32xf32>
    %119 = arith.addf %117, %118 : vector<8x32xf32>
    %120 = math.tanh %119 : vector<8x32xf32>
    %121 = arith.mulf %116, %120 : vector<8x32xf32>
    %122 = vector.extract_strided_slice %13 {offsets = [40, 0], sizes = [8, 128], strides = [1, 1]} : vector<64x128xf32> to vector<8x128xf32>
    %cst_35 = arith.constant dense<0.000000e+00> : vector<8x128xf32>
    %123 = tpu.matmul %121, %14, %cst_35 {dimension_numbers = #tpu.dot_dimension_numbers<[1], [0], [0], [1], [0, 0, 1, 1], [], []>} : vector<8x32xf32>, vector<32x128xf32>, vector<8x128xf32> -> vector<8x128xf32>
    %124 = arith.addf %122, %123 : vector<8x128xf32>
    %125 = arith.negf %124 : vector<8x128xf32>
    %126 = math.exp %125 : vector<8x128xf32>
    %cst_36 = arith.constant 1.000000e+00 : f32
    %127 = vector.broadcast %cst_36 : f32 to vector<8x128xf32>
    %128 = arith.addf %127, %126 : vector<8x128xf32>
    %129 = arith.divf %127, %128 : vector<8x128xf32>
    %130 = vector.extract_strided_slice %129 {offsets = [0, 0], sizes = [8, 32], strides = [1, 1]} : vector<8x128xf32> to vector<8x32xf32>
    %131 = vector.extract_strided_slice %129 {offsets = [0, 32], sizes = [8, 32], strides = [1, 1]} : vector<8x128xf32> to vector<8x32xf32>
    %132 = vector.extract_strided_slice %129 {offsets = [0, 64], sizes = [8, 32], strides = [1, 1]} : vector<8x128xf32> to vector<8x32xf32>
    %cst_37 = arith.constant 2.000000e+00 : f32
    %133 = vector.broadcast %cst_37 : f32 to vector<8x32xf32>
    %134 = arith.mulf %133, %132 : vector<8x32xf32>
    %cst_38 = arith.constant 1.000000e+00 : f32
    %135 = vector.broadcast %cst_38 : f32 to vector<8x32xf32>
    %136 = arith.subf %134, %135 : vector<8x32xf32>
    %137 = vector.extract_strided_slice %129 {offsets = [0, 96], sizes = [8, 32], strides = [1, 1]} : vector<8x128xf32> to vector<8x32xf32>
    %138 = arith.mulf %131, %119 : vector<8x32xf32>
    %139 = arith.mulf %130, %136 : vector<8x32xf32>
    %140 = arith.addf %138, %139 : vector<8x32xf32>
    %141 = math.tanh %140 : vector<8x32xf32>
    %142 = arith.mulf %137, %141 : vector<8x32xf32>
    %143 = vector.extract_strided_slice %13 {offsets = [48, 0], sizes = [8, 128], strides = [1, 1]} : vector<64x128xf32> to vector<8x128xf32>
    %cst_39 = arith.constant dense<0.000000e+00> : vector<8x128xf32>
    %144 = tpu.matmul %142, %14, %cst_39 {dimension_numbers = #tpu.dot_dimension_numbers<[1], [0], [0], [1], [0, 0, 1, 1], [], []>} : vector<8x32xf32>, vector<32x128xf32>, vector<8x128xf32> -> vector<8x128xf32>
    %145 = arith.addf %143, %144 : vector<8x128xf32>
    %146 = arith.negf %145 : vector<8x128xf32>
    %147 = math.exp %146 : vector<8x128xf32>
    %cst_40 = arith.constant 1.000000e+00 : f32
    %148 = vector.broadcast %cst_40 : f32 to vector<8x128xf32>
    %149 = arith.addf %148, %147 : vector<8x128xf32>
    %150 = arith.divf %148, %149 : vector<8x128xf32>
    %151 = vector.extract_strided_slice %150 {offsets = [0, 0], sizes = [8, 32], strides = [1, 1]} : vector<8x128xf32> to vector<8x32xf32>
    %152 = vector.extract_strided_slice %150 {offsets = [0, 32], sizes = [8, 32], strides = [1, 1]} : vector<8x128xf32> to vector<8x32xf32>
    %153 = vector.extract_strided_slice %150 {offsets = [0, 64], sizes = [8, 32], strides = [1, 1]} : vector<8x128xf32> to vector<8x32xf32>
    %cst_41 = arith.constant 2.000000e+00 : f32
    %154 = vector.broadcast %cst_41 : f32 to vector<8x32xf32>
    %155 = arith.mulf %154, %153 : vector<8x32xf32>
    %cst_42 = arith.constant 1.000000e+00 : f32
    %156 = vector.broadcast %cst_42 : f32 to vector<8x32xf32>
    %157 = arith.subf %155, %156 : vector<8x32xf32>
    %158 = vector.extract_strided_slice %150 {offsets = [0, 96], sizes = [8, 32], strides = [1, 1]} : vector<8x128xf32> to vector<8x32xf32>
    %159 = arith.mulf %152, %140 : vector<8x32xf32>
    %160 = arith.mulf %151, %157 : vector<8x32xf32>
    %161 = arith.addf %159, %160 : vector<8x32xf32>
    %162 = math.tanh %161 : vector<8x32xf32>
    %163 = arith.mulf %158, %162 : vector<8x32xf32>
    %164 = vector.extract_strided_slice %13 {offsets = [56, 0], sizes = [8, 128], strides = [1, 1]} : vector<64x128xf32> to vector<8x128xf32>
    %cst_43 = arith.constant dense<0.000000e+00> : vector<8x128xf32>
    %165 = tpu.matmul %163, %14, %cst_43 {dimension_numbers = #tpu.dot_dimension_numbers<[1], [0], [0], [1], [0, 0, 1, 1], [], []>} : vector<8x32xf32>, vector<32x128xf32>, vector<8x128xf32> -> vector<8x128xf32>
    %166 = arith.addf %164, %165 : vector<8x128xf32>
    %167 = arith.negf %166 : vector<8x128xf32>
    %168 = math.exp %167 : vector<8x128xf32>
    %cst_44 = arith.constant 1.000000e+00 : f32
    %169 = vector.broadcast %cst_44 : f32 to vector<8x128xf32>
    %170 = arith.addf %169, %168 : vector<8x128xf32>
    %171 = arith.divf %169, %170 : vector<8x128xf32>
    %172 = vector.extract_strided_slice %171 {offsets = [0, 0], sizes = [8, 32], strides = [1, 1]} : vector<8x128xf32> to vector<8x32xf32>
    %173 = vector.extract_strided_slice %171 {offsets = [0, 32], sizes = [8, 32], strides = [1, 1]} : vector<8x128xf32> to vector<8x32xf32>
    %174 = vector.extract_strided_slice %171 {offsets = [0, 64], sizes = [8, 32], strides = [1, 1]} : vector<8x128xf32> to vector<8x32xf32>
    %cst_45 = arith.constant 2.000000e+00 : f32
    %175 = vector.broadcast %cst_45 : f32 to vector<8x32xf32>
    %176 = arith.mulf %175, %174 : vector<8x32xf32>
    %cst_46 = arith.constant 1.000000e+00 : f32
    %177 = vector.broadcast %cst_46 : f32 to vector<8x32xf32>
    %178 = arith.subf %176, %177 : vector<8x32xf32>
    %179 = vector.extract_strided_slice %171 {offsets = [0, 96], sizes = [8, 32], strides = [1, 1]} : vector<8x128xf32> to vector<8x32xf32>
    %180 = arith.mulf %173, %161 : vector<8x32xf32>
    %181 = arith.mulf %172, %178 : vector<8x32xf32>
    %182 = arith.addf %180, %181 : vector<8x32xf32>
    %183 = math.tanh %182 : vector<8x32xf32>
    %184 = arith.mulf %179, %183 : vector<8x32xf32>
    %185 = tpu.concatenate %37, %58, %79, %100, %121, %142, %163, %184 in 1 : vector<8x32xf32>, vector<8x32xf32>, vector<8x32xf32>, vector<8x32xf32>, vector<8x32xf32>, vector<8x32xf32>, vector<8x32xf32>, vector<8x32xf32> -> vector<8x256xf32>
    %c0_47 = arith.constant 0 : index
    %c0_48 = arith.constant 0 : index
    %186 = vector.load %arg6[%c0_47, %c0_48] : memref<8x256xf32, #tpu.memory_space<vmem>>, vector<8x256xf32>
    tpu.vector_store %arg6[%c0_47, %c0_48], %185 {strides = array<i32>} : memref<8x256xf32, #tpu.memory_space<vmem>>, vector<8x256xf32>,
    return
  }
}

</mosaic_0001>

<bundles_post_ra>
// kernel: encoder_forward.1
= control target key start
LH: loop header
LB: loop body
LE: loop exit
PB: predicated region body
PF: predicated region fallthrough
CT: control target
= control target key end

     0   :  { %vm64_vm0 = vcmask 130048   ;;  %vm138_vm1 = vcmask 261120   ;;  %v844_v40 = vmov 0.0   ;;  %s846_s18 = smov 32   ;;  %s847_s19 = smov 96   ;;  %s1054_s1 = inlined_call_operand.vmem [shape: bf16[16,32], index: 1, kind: input, shape index: {}]   ;;  %s1055_s0 = inlined_call_operand.vmem [shape: bf16[64,16], index: 0, kind: input, shape index: {}]   ;;  %s1056_s2 = inlined_call_operand.vmem [shape: f32[1,32], index: 2, kind: input, shape index: {}]   ;;  %s1057_s5 = inlined_call_operand.vmem [shape: f32[1,128], index: 5, kind: input, shape index: {}]   ;;  %s1058_s3 = inlined_call_operand.vmem [shape: bf16[32,128], index: 3, kind: input, shape index: {}]   ;;  %s1059_s4 = inlined_call_operand.vmem [shape: f32[32,128], index: 4, kind: input, shape index: {}]   ;;  %s1060_s6 = inlined_call_operand.vmem [shape: f32[8,256], index: 6, kind: output, shape index: {}]  }
   0x1   :  { %v785_v0 = vld [vmem:[%s1054_s1] sm:$0xff]  ;;  %v782_v2 = vld [vmem:[%s1055_s0 + $0x8] sm:$0xff]  ;;  %v783_v3 = vld [vmem:[%s1055_s0 + $0x10] sm:$0xff] }
   0x2   :  { %v781_v1 = vld [vmem:[%s1055_s0] sm:$0xff]  ;;  %84 = vmatpush.bf16.msra.mxu0 %v785_v0  ;;  %v784_v4 = vld [vmem:[%s1055_s0 + $0x18] sm:$0xff]  ;;  %v787_v5 = vld [vmem:[%s1058_s3 + $0x8] sm:$0xff] }
   0x3   :  { %157 = vmatpush.bf16.msra.mxu1 %v787_v5  ;;  %788 = vmatpush.bf16.msra.mxu2 %v787_v5  ;;  %v786_v6 = vld [vmem:[%s1058_s3] sm:$0xff]  ;;  %v912_v22 = vld [vmem:[%s1059_s4 + $0x18] sm:$0xff]  ;;  %v917_v23 = vld [vmem:[%s1059_s4 + $0x10] sm:$0xff] }
   0x4   :  { %v794_v8 = vld [vmem:[%s1056_s2] ss:$0 sm:$0xff]  ;;  %263 = vmatpush.msra.mxu3 %v912_v22  ;;  %v924_v25 = vld [vmem:[%s1059_s4 + $0x8] sm:$0xff] }
   0x5   :  { %742 = vmatmul.msk.bf16.vlgmr.msra.gmra.mxu0 %vm64_vm0, %v781_v1  ;;  %v931_v26 = vld [vmem:[%s1059_s4] sm:$0xff] }
   0x6   :  { %264 = vmatpush.msra.mxu3 %v917_v23  ;;  %v954_v41 = vld [vmem:[%s1057_s5] ss:$0 sm:$0xff]  ;;  %s845_s5 = smov 64  }
   0x7   :  { %158 = vmatpush.bf16.msra.mxu1 %v786_v6  ;;  %789 = vmatpush.bf16.msra.mxu2 %v786_v6 }
   0x8   :  { %265 = vmatpush.msra.mxu3 %v924_v25 }
   0xa   :  { %266 = vmatpush.msra.mxu3 %v931_v26 }
   0xb   :  { %199 = vmatpush.msrb.mxu2 %v912_v22 }
   0xc   :  { %391 = vmatpush.msrb.mxu3 %v912_v22 }
   0xd   :  { %200 = vmatpush.msrb.mxu2 %v917_v23 }
   0xe   :  { %392 = vmatpush.msrb.mxu3 %v917_v23 }
   0xf   :  { %201 = vmatpush.msrb.mxu2 %v924_v25 }
  0x10   :  { %393 = vmatpush.msrb.mxu3 %v924_v25 }
  0x11   :  { %202 = vmatpush.msrb.mxu2 %v931_v26 }
  0x12   :  { %394 = vmatpush.msrb.mxu3 %v931_v26 }
  0x15   :  { %743 = vmatmul.msk.bf16.gmra.mxu0 %vm64_vm0, %v782_v2 }
  0x25   :  { %744 = vmatmul.msk.bf16.gmra.mxu0 %vm64_vm0, %v783_v3 }
  0x35   :  { %745 = vmatmul.msk.bf16.gmra.mxu0 %vm64_vm0, %v784_v4 }
  0x82   :  { %v86_v7 = vpop.f32.mrf.mxu0 }
  0x83   :  { %v87_v9 = vadd.f32 %v794_v8, %v86_v7 }
  0x85   :  { %v106_v12 = vmax.f32 %v87_v9, 0.0 }
  0x8a   :  { %v88_v10 = vpop.f32.mrf.mxu0 }
  0x8b   :  { %v89_v11 = vadd.f32 %v794_v8, %v88_v10 }
  0x8d   :  { %v107_v13 = vmax.f32 %v89_v11, 0.0 }
  0x8f   :  { %v114_v14 = vpack.c.bf16 %v107_v13, %v106_v12 }
  0x91   :  { %754 = vmatmul.msk.bf16.vlgmr.msra.gmra.mxu1 %vm138_vm1, %v114_v14 }
  0x92   :  { %v91_v15 = vpop.f32.mrf.mxu0 }
  0x93   :  { %v92_v16 = vadd.f32 %v794_v8, %v91_v15 }
  0x95   :  { %v108_v19 = vmax.f32 %v92_v16, 0.0 }
  0x9a   :  { %v93_v17 = vpop.f32.mrf.mxu0 }
  0x9b   :  { %v94_v18 = vadd.f32 %v794_v8, %v93_v17 }
  0x9d   :  { %v109_v20 = vmax.f32 %v94_v18, 0.0 }
  0x9f   :  { %v115_v21 = vpack.c.bf16 %v109_v20, %v108_v19 }
  0xa1   :  { %755 = vmatmul.msk.bf16.gmra.mxu1 %vm138_vm1, %v115_v21 }
  0xa2   :  { %v96_v24 = vpop.f32.mrf.mxu0 }
  0xa3   :  { %v97_v27 = vadd.f32 %v794_v8, %v96_v24 }
  0xa5   :  { %v110_v30 = vmax.f32 %v97_v27, 0.0 }
  0xaa   :  { %v98_v28 = vpop.f32.mrf.mxu0 }
  0xab   :  { %v99_v29 = vadd.f32 %v794_v8, %v98_v28 }
  0xad   :  { %v111_v31 = vmax.f32 %v99_v29, 0.0 }
  0xaf   :  { %v116_v32 = vpack.c.bf16 %v111_v31, %v110_v30 }
  0xb1   :  { %756 = vmatmul.msk.bf16.gmra.mxu1 %vm138_vm1, %v116_v32 }
  0xb2   :  { %v101_v33 = vpop.f32.mrf.mxu0 }
  0xb3   :  { %v102_v34 = vadd.f32 %v794_v8, %v101_v33 }
  0xb5   :  { %v112_v37 = vmax.f32 %v102_v34, 0.0 }
  0xba   :  { %v103_v35 = vpop.f32.mrf.mxu0 }
  0xbb   :  { %v104_v36 = vadd.f32 %v794_v8, %v103_v35 }
  0xbd   :  { %v113_v38 = vmax.f32 %v104_v36, 0.0 }
  0xbf   :  { %v117_v39 = vpack.c.bf16 %v113_v38, %v112_v37 }
  0xc1   :  { %757 = vmatmul.msk.bf16.vlgmr.msra.gmra.mxu2 %vm138_vm1, %v117_v39 }
  0xc2   :  { %327 = vmatpush.msra.mxu2 %v912_v22 }
  0xc4   :  { %328 = vmatpush.msra.mxu2 %v917_v23 }
  0xc6   :  { %329 = vmatpush.msra.mxu2 %v924_v25 }
  0xc8   :  { %330 = vmatpush.msra.mxu2 %v931_v26 }
  0xd1   :  { %203 = vmatmul.f32.vlgmr.msrb.gmra.mxu2 %v844_v40 }
  0xd2   :  { %455 = vmatpush.msrb.mxu2 %v912_v22 }
  0xd4   :  { %456 = vmatpush.msrb.mxu2 %v917_v23 }
  0xd6   :  { %457 = vmatpush.msrb.mxu2 %v924_v25 }
  0xd8   :  { %458 = vmatpush.msrb.mxu2 %v931_v26 }
 0x10e   :  { %v160_v46 = vpop.f32.mrf.mxu1 }
 0x10f   :  { %v161_v47 = vadd.f32 %v954_v41, %v160_v46 }
 0x116   :  { %v162_v10 = vpop.f32.mrf.mxu1 }
 0x117   :  { %v163_v11 = vadd.f32 %v954_v41, %v162_v10 }
 0x144   :  { %v175_v42 = vpop.f32.mrf.mxu2 }
 0x145   :  { %v957_v43 = vadd.f32 %v954_v41, %v175_v42 }
 0x14c   :  { %v177_v44 = vpop.f32.mrf.mxu2 }
 0x14d   :  { %v960_v45 = vadd.f32 %v954_v41, %v177_v44  ;;  %v165_v44 = vpop.f32.mrf.mxu1 }
 0x14e   :  { %v166_v46 = vadd.f32 %v954_v41, %v165_v44 }
 0x154   :  { %v204_v48 = vpop.f32.mrf.mxu2 }
 0x155   :  { %v207_v49 = vadd.f32 %v204_v48, %v161_v47  ;;  %v167_v10 = vpop.f32.mrf.mxu1 }
 0x157   :  { %v758_v50 = vmul.f32 -1.442695, %v207_v49 }
 0x159   :  { %796 = vpow2.f32 %v758_v50 }
 0x15f   :  { %v797_v51 = vpop.eup %796 }
 0x160   :  { %v211_v52 = vadd.f32 1.0, %v797_v51 }
 0x162   :  { %798 = vrcp.f32 %v211_v52  ;;  %v223_v56 = vand.u32 2147483648, %v211_v52  ;;  %v221_v58 = vand.u32 2147483647, %v211_v52  ;;  %vm217_vm3 = vweird.f32 %v211_v52 }
 0x164   :  { %v224_v60 = vor.u32 1.1754944e-38, %v223_v56  ;;  %vm222_vm5 = vcmp.eq.f32.partialorder %v221_v58, 8.507059e+37 }
 0x168   :  { %v799_v53 = vpop.eup %798 }
 0x169   :  { %v213_v54 = vmul.f32 %v799_v53, %v211_v52  ;;  %vm218_vm2 = vweird.f32 %v799_v53 }
 0x16a   :  { %vm219_vm4 = vmor %vm217_vm3, %vm218_vm2 }
 0x16b   :  { %v214_v55 = vsub.f32 1.0, %v213_v54 }
 0x16d   :  { %v215_v57 = vmul.f32 %v799_v53, %v214_v55 }
 0x16f   :  { %v216_v59 = vadd.f32 %v799_v53, %v215_v57 }
 0x171   :  { %v220_v61 = vsel %vm219_vm4, %v799_v53, %v216_v59 }
 0x172   :  { %v225_v62 = vsel %vm222_vm5, %v224_v60, %v220_v61 }
 0x173   :  { %v227_v63 = vmul.f32 2.0, %v225_v62  ;;  %v229_v3 = vmul.f32 0.0, %v225_v62 }
 0x175   :  { %v759_v0 = vadd.f32 -1.0, %v227_v63 }
 0x177   :  { %231 = vrot.lane.b32.xlu0 %v759_v0, %s845_s5 }
 0x1e9   :  { %v232_v1 = vpop.permute.xlu0 %231 }
 0x1ea   :  { %v234_v2 = vmul.f32 %v232_v1, %v225_v62 }
 0x1ec   :  { %236 = vrot.lane.b32.xlu0 %v234_v2, %s846_s18 }
 0x25e   :  { %v237_v4 = vpop.permute.xlu0 %236 }
 0x25f   :  { %v239_v5 = vadd.f32 %v237_v4, %v229_v3 }
 0x261   :  { %800 = vtanh.f32 %v239_v5 }
 0x267   :  { %v801_v6 = vpop.eup %800 }
 0x268   :  { %242 = vrot.lane.b32.xlu1 %v801_v6, %s845_s5 }
 0x2da   :  { %v243_v7 = vpop.permute.xlu1 %242 }
 0x2db   :  { %v245_v8 = vmul.f32 %v243_v7, %v225_v62 }
 0x2dd   :  { %247 = vrot.lane.b32.xlu1 %v245_v8, %s846_s18 }
 0x34f   :  { %v967_v9 = vpop.permute.xlu1 %247 }
 0x350   :  { %760 = vmatmul.msk.f32.vlgmr.msra.gmra.mxu3 %vm138_vm1, %v967_v9 }
 0x351   :  { %519 = vmatpush.msra.mxu3 %v912_v22 }
 0x353   :  { %520 = vmatpush.msra.mxu3 %v917_v23 }
 0x355   :  { %521 = vmatpush.msra.mxu3 %v924_v25 }
 0x357   :  { %522 = vmatpush.msra.mxu3 %v931_v26 }
 0x3d3   :  { %v268_v12 = vpop.f32.mrf.mxu3 }
 0x3d4   :  { %v271_v13 = vadd.f32 %v268_v12, %v163_v11  ;;  %v168_v11 = vadd.f32 %v954_v41, %v167_v10 }
 0x3d6   :  { %v761_v14 = vmul.f32 -1.442695, %v271_v13 }
 0x3d8   :  { %802 = vpow2.f32 %v761_v14 }
 0x3de   :  { %v803_v15 = vpop.eup %802 }
 0x3df   :  { %v275_v16 = vadd.f32 1.0, %v803_v15 }
 0x3e1   :  { %804 = vrcp.f32 %v275_v16  ;;  %v287_v20 = vand.u32 2147483648, %v275_v16  ;;  %v285_v24 = vand.u32 2147483647, %v275_v16  ;;  %vm281_vm7 = vweird.f32 %v275_v16 }
 0x3e3   :  { %v288_v28 = vor.u32 1.1754944e-38, %v287_v20  ;;  %vm286_vm9 = vcmp.eq.f32.partialorder %v285_v24, 8.507059e+37 }
 0x3e7   :  { %v805_v17 = vpop.eup %804 }
 0x3e8   :  { %v277_v18 = vmul.f32 %v805_v17, %v275_v16  ;;  %vm282_vm6 = vweird.f32 %v805_v17 }
 0x3e9   :  { %vm283_vm8 = vmor %vm281_vm7, %vm282_vm6 }
 0x3ea   :  { %v278_v19 = vsub.f32 1.0, %v277_v18 }
 0x3ec   :  { %v279_v21 = vmul.f32 %v805_v17, %v278_v19 }
 0x3ee   :  { %v280_v27 = vadd.f32 %v805_v17, %v279_v21 }
 0x3f0   :  { %v284_v29 = vsel %vm283_vm8, %v805_v17, %v280_v27 }
 0x3f1   :  { %v289_v30 = vsel %vm286_vm9, %v288_v28, %v284_v29 }
 0x3f2   :  { %v291_v31 = vmul.f32 2.0, %v289_v30  ;;  %v293_v35 = vmul.f32 %v289_v30, %v239_v5 }
 0x3f4   :  { %v762_v32 = vadd.f32 -1.0, %v291_v31 }
 0x3f6   :  { %295 = vrot.lane.b32.xlu2 %v762_v32, %s845_s5 }
 0x450   :  { %v296_v33 = vpop.permute.xlu2 %295 }
 0x451   :  { %v298_v34 = vmul.f32 %v296_v33, %v289_v30 }
 0x453   :  { %300 = vrot.lane.b32.xlu2 %v298_v34, %s846_s18 }
 0x4ad   :  { %v301_v36 = vpop.permute.xlu2 %300 }
 0x4ae   :  { %v303_v37 = vadd.f32 %v301_v36, %v293_v35 }
 0x4b0   :  { %806 = vtanh.f32 %v303_v37 }
 0x4b6   :  { %v807_v38 = vpop.eup %806 }
 0x4b7   :  { %306 = vrot.lane.b32.xlu0 %v807_v38, %s845_s5  ;;  %v170_v38 = vpop.f32.mrf.mxu1 }
 0x529   :  { %v307_v39 = vpop.permute.xlu0 %306 }
 0x52a   :  { %v979_v40 = vmul.f32 %v307_v39, %v289_v30  ;;  %v171_v39 = vadd.f32 %v954_v41, %v170_v38 }
 0x52c   :  { %311 = vrot.lane.b32.xlu1 %v979_v40, %s846_s18 }
 0x59e   :  { %v312_v42 = vpop.permute.xlu1 %311 }
 0x59f   :  { %763 = vmatmul.msk.f32.vlgmr.msra.gmra.mxu2 %vm138_vm1, %v312_v42 }
 0x5a0   :  { %583 = vmatpush.msra.mxu2 %v912_v22 }
 0x5a2   :  { %584 = vmatpush.msra.mxu2 %v917_v23 }
 0x5a4   :  { %585 = vmatpush.msra.mxu2 %v924_v25 }
 0x5a6   :  { %586 = vmatpush.msra.mxu2 %v931_v26 }
 0x622   :  { %v332_v47 = vpop.f32.mrf.mxu2 }
 0x623   :  { %v335_v48 = vadd.f32 %v332_v47, %v166_v46 }
 0x625   :  { %v764_v49 = vmul.f32 -1.442695, %v335_v48 }
 0x627   :  { %808 = vpow2.f32 %v764_v49 }
 0x62d   :  { %v809_v50 = vpop.eup %808 }
 0x62e   :  { %v339_v51 = vadd.f32 1.0, %v809_v50 }
 0x630   :  { %810 = vrcp.f32 %v339_v51  ;;  %v351_v55 = vand.u32 2147483648, %v339_v51  ;;  %v349_v57 = vand.u32 2147483647, %v339_v51  ;;  %vm345_vm11 = vweird.f32 %v339_v51 }
 0x632   :  { %v352_v59 = vor.u32 1.1754944e-38, %v351_v55  ;;  %vm350_vm13 = vcmp.eq.f32.partialorder %v349_v57, 8.507059e+37 }
 0x636   :  { %v811_v52 = vpop.eup %810 }
 0x637   :  { %v341_v53 = vmul.f32 %v811_v52, %v339_v51  ;;  %vm346_vm10 = vweird.f32 %v811_v52 }
 0x638   :  { %vm347_vm12 = vmor %vm345_vm11, %vm346_vm10 }
 0x639   :  { %v342_v54 = vsub.f32 1.0, %v341_v53 }
 0x63b   :  { %v343_v56 = vmul.f32 %v811_v52, %v342_v54 }
 0x63d   :  { %v344_v58 = vadd.f32 %v811_v52, %v343_v56 }
 0x63f   :  { %v348_v60 = vsel %vm347_vm12, %v811_v52, %v344_v58 }
 0x640   :  { %v353_v61 = vsel %vm350_vm13, %v352_v59, %v348_v60 }
 0x641   :  { %v355_v62 = vmul.f32 2.0, %v353_v61  ;;  %v357_v2 = vmul.f32 %v353_v61, %v303_v37 }
 0x643   :  { %v765_v63 = vadd.f32 -1.0, %v355_v62 }
 0x645   :  { %359 = vrot.lane.b32.xlu2 %v765_v63, %s845_s5 }
 0x69f   :  { %v360_v0 = vpop.permute.xlu2 %359 }
 0x6a0   :  { %v362_v1 = vmul.f32 %v360_v0, %v353_v61 }
 0x6a2   :  { %364 = vrot.lane.b32.xlu0 %v362_v1, %s846_s18 }
 0x714   :  { %v365_v3 = vpop.permute.xlu0 %364 }
 0x715   :  { %v367_v4 = vadd.f32 %v365_v3, %v357_v2 }
 0x717   :  { %812 = vtanh.f32 %v367_v4 }
 0x71d   :  { %v813_v5 = vpop.eup %812 }
 0x71e   :  { %370 = vrot.lane.b32.xlu1 %v813_v5, %s845_s5 }
 0x790   :  { %v371_v6 = vpop.permute.xlu1 %370 }
 0x791   :  { %v992_v7 = vmul.f32 %v371_v6, %v353_v61  ;;  %v172_v6 = vpop.f32.mrf.mxu1 }
 0x793   :  { %375 = vrot.lane.b32.xlu2 %v992_v7, %s846_s18 }
 0x7ed   :  { %v376_v8 = vpop.permute.xlu2 %375 }
 0x7ee   :  { %766 = vmatmul.msk.f32.vlgmr.msrb.gmra.mxu3 %vm138_vm1, %v376_v8  ;;  %v173_v8 = vadd.f32 %v954_v41, %v172_v6 }
 0x7ef   :  { %647 = vmatpush.msrb.mxu3 %v912_v22 }
 0x7f1   :  { %648 = vmatpush.msrb.mxu3 %v917_v23 }
 0x7f3   :  { %649 = vmatpush.msrb.mxu3 %v924_v25 }
 0x7f5   :  { %650 = vmatpush.msrb.mxu3 %v931_v26 }
 0x871   :  { %v396_v12 = vpop.f32.mrf.mxu3 }
 0x872   :  { %v399_v13 = vadd.f32 %v396_v12, %v168_v11 }
 0x874   :  { %v767_v14 = vmul.f32 -1.442695, %v399_v13 }
 0x876   :  { %814 = vpow2.f32 %v767_v14 }
 0x87c   :  { %v815_v15 = vpop.eup %814 }
 0x87d   :  { %v403_v16 = vadd.f32 1.0, %v815_v15 }
 0x87f   :  { %816 = vrcp.f32 %v403_v16  ;;  %v415_v22 = vand.u32 2147483648, %v403_v16  ;;  %v413_v23 = vand.u32 2147483647, %v403_v16  ;;  %vm409_vm15 = vweird.f32 %v403_v16 }
 0x881   :  { %v416_v26 = vor.u32 1.1754944e-38, %v415_v22  ;;  %vm414_vm2 = vcmp.eq.f32.partialorder %v413_v23, 8.507059e+37 }
 0x885   :  { %v817_v17 = vpop.eup %816 }
 0x886   :  { %v405_v18 = vmul.f32 %v817_v17, %v403_v16  ;;  %vm410_vm14 = vweird.f32 %v817_v17 }
 0x887   :  { %vm411_vm0 = vmor %vm409_vm15, %vm410_vm14 }
 0x888   :  { %v406_v19 = vsub.f32 1.0, %v405_v18 }
 0x88a   :  { %v407_v20 = vmul.f32 %v817_v17, %v406_v19 }
 0x88c   :  { %v408_v25 = vadd.f32 %v817_v17, %v407_v20 }
 0x88e   :  { %v412_v21 = vsel %vm411_vm0, %v817_v17, %v408_v25 }
 0x88f   :  { %v417_v24 = vsel %vm414_vm2, %v416_v26, %v412_v21 }
 0x890   :  { %v419_v27 = vmul.f32 2.0, %v417_v24  ;;  %v421_v31 = vmul.f32 %v417_v24, %v367_v4 }
 0x892   :  { %v768_v28 = vadd.f32 -1.0, %v419_v27 }
 0x894   :  { %423 = vrot.lane.b32.xlu0 %v768_v28, %s845_s5 }
 0x906   :  { %v424_v29 = vpop.permute.xlu0 %423 }
 0x907   :  { %v426_v30 = vmul.f32 %v424_v29, %v417_v24 }
 0x909   :  { %428 = vrot.lane.b32.xlu1 %v426_v30, %s846_s18 }
 0x97b   :  { %v429_v32 = vpop.permute.xlu1 %428 }
 0x97c   :  { %v431_v33 = vadd.f32 %v429_v32, %v421_v31 }
 0x97e   :  { %818 = vtanh.f32 %v431_v33 }
 0x984   :  { %v819_v34 = vpop.eup %818 }
 0x985   :  { %434 = vrot.lane.b32.xlu2 %v819_v34, %s845_s5 }
 0x9df   :  { %v435_v35 = vpop.permute.xlu2 %434 }
 0x9e0   :  { %v1005_v36 = vmul.f32 %v435_v35, %v417_v24 }
 0x9e2   :  { %439 = vrot.lane.b32.xlu0 %v1005_v36, %s846_s18 }
 0xa54   :  { %v440_v37 = vpop.permute.xlu0 %439 }
 0xa55   :  { %769 = vmatmul.msk.f32.vlgmr.msrb.gmra.mxu2 %vm138_vm1, %v440_v37 }
 0xad8   :  { %v460_v42 = vpop.f32.mrf.mxu2 }
 0xad9   :  { %v463_v44 = vadd.f32 %v460_v42, %v171_v39 }
 0xadb   :  { %v770_v46 = vmul.f32 -1.442695, %v463_v44 }
 0xadd   :  { %820 = vpow2.f32 %v770_v46 }
 0xae3   :  { %v821_v47 = vpop.eup %820 }
 0xae4   :  { %v467_v48 = vadd.f32 1.0, %v821_v47 }
 0xae6   :  { %822 = vrcp.f32 %v467_v48  ;;  %v479_v52 = vand.u32 2147483648, %v467_v48  ;;  %v477_v54 = vand.u32 2147483647, %v467_v48  ;;  %vm473_vm4 = vweird.f32 %v467_v48 }
 0xae8   :  { %v480_v56 = vor.u32 1.1754944e-38, %v479_v52  ;;  %vm478_vm6 = vcmp.eq.f32.partialorder %v477_v54, 8.507059e+37 }
 0xaec   :  { %v823_v49 = vpop.eup %822 }
 0xaed   :  { %v469_v50 = vmul.f32 %v823_v49, %v467_v48  ;;  %vm474_vm3 = vweird.f32 %v823_v49 }
 0xaee   :  { %vm475_vm5 = vmor %vm473_vm4, %vm474_vm3  ;;  %vm709_vm4 = vcmask 523264  }
 0xaef   :  { %v470_v51 = vsub.f32 1.0, %v469_v50 }
 0xaf1   :  { %v471_v53 = vmul.f32 %v823_v49, %v470_v51 }
 0xaf3   :  { %v472_v55 = vadd.f32 %v823_v49, %v471_v53 }
 0xaf5   :  { %v476_v57 = vsel %vm475_vm5, %v823_v49, %v472_v55  ;;  %vm711_vm5 = vcmask 785408  }
 0xaf6   :  { %v481_v58 = vsel %vm478_vm6, %v480_v56, %v476_v57 }
 0xaf7   :  { %v483_v59 = vmul.f32 2.0, %v481_v58  ;;  %v485_v63 = vmul.f32 %v481_v58, %v431_v33 }
 0xaf9   :  { %v771_v60 = vadd.f32 -1.0, %v483_v59 }
 0xafb   :  { %487 = vrot.lane.b32.xlu1 %v771_v60, %s845_s5 }
 0xb6d   :  { %v488_v61 = vpop.permute.xlu1 %487 }
 0xb6e   :  { %v490_v62 = vmul.f32 %v488_v61, %v481_v58 }
 0xb70   :  { %492 = vrot.lane.b32.xlu2 %v490_v62, %s846_s18 }
 0xbca   :  { %v493_v0 = vpop.permute.xlu2 %492 }
 0xbcb   :  { %v495_v1 = vadd.f32 %v493_v0, %v485_v63 }
 0xbcd   :  { %824 = vtanh.f32 %v495_v1 }
 0xbd3   :  { %v825_v2 = vpop.eup %824 }
 0xbd4   :  { %498 = vrot.lane.b32.xlu0 %v825_v2, %s845_s5 }
 0xc46   :  { %v499_v3 = vpop.permute.xlu0 %498 }
 0xc47   :  { %v501_v4 = vmul.f32 %v499_v3, %v481_v58 }
 0xc49   :  { %503 = vrot.lane.b32.xlu1 %v501_v4, %s846_s18 }
 0xcbb   :  { %v1015_v5 = vpop.permute.xlu1 %503 }
 0xcbc   :  { %772 = vmatmul.msk.f32.vlgmr.msra.gmra.mxu3 %vm138_vm1, %v1015_v5 }
 0xd3f   :  { %v524_v10 = vpop.f32.mrf.mxu3 }
 0xd40   :  { %v527_v11 = vadd.f32 %v524_v10, %v173_v8 }
 0xd42   :  { %v773_v12 = vmul.f32 -1.442695, %v527_v11 }
 0xd44   :  { %826 = vpow2.f32 %v773_v12 }
 0xd4a   :  { %v827_v13 = vpop.eup %826 }
 0xd4b   :  { %v531_v14 = vadd.f32 1.0, %v827_v13 }
 0xd4d   :  { %828 = vrcp.f32 %v531_v14  ;;  %v543_v18 = vand.u32 2147483648, %v531_v14  ;;  %v541_v22 = vand.u32 2147483647, %v531_v14  ;;  %vm537_vm8 = vweird.f32 %v531_v14 }
 0xd4f   :  { %v544_v23 = vor.u32 1.1754944e-38, %v543_v18  ;;  %vm542_vm10 = vcmp.eq.f32.partialorder %v541_v22, 8.507059e+37 }
 0xd53   :  { %v829_v15 = vpop.eup %828 }
 0xd54   :  { %v533_v16 = vmul.f32 %v829_v15, %v531_v14  ;;  %vm538_vm7 = vweird.f32 %v829_v15 }
 0xd55   :  { %vm539_vm9 = vmor %vm537_vm8, %vm538_vm7 }
 0xd56   :  { %v534_v17 = vsub.f32 1.0, %v533_v16 }
 0xd58   :  { %v535_v19 = vmul.f32 %v829_v15, %v534_v17 }
 0xd5a   :  { %v536_v20 = vadd.f32 %v829_v15, %v535_v19 }
 0xd5c   :  { %v540_v25 = vsel %vm539_vm9, %v829_v15, %v536_v20 }
 0xd5d   :  { %v545_v41 = vsel %vm542_vm10, %v544_v23, %v540_v25 }
 0xd5e   :  { %v547_v26 = vmul.f32 2.0, %v545_v41  ;;  %v549_v28 = vmul.f32 %v545_v41, %v495_v1 }
 0xd60   :  { %v774_v21 = vadd.f32 -1.0, %v547_v26 }
 0xd62   :  { %551 = vrot.lane.b32.xlu2 %v774_v21, %s845_s5 }
 0xdbc   :  { %v552_v24 = vpop.permute.xlu2 %551 }
 0xdbd   :  { %v554_v27 = vmul.f32 %v552_v24, %v545_v41 }
 0xdbf   :  { %556 = vrot.lane.b32.xlu0 %v554_v27, %s846_s18 }
 0xe31   :  { %v557_v29 = vpop.permute.xlu0 %556 }
 0xe32   :  { %v559_v30 = vadd.f32 %v557_v29, %v549_v28 }
 0xe34   :  { %830 = vtanh.f32 %v559_v30 }
 0xe3a   :  { %v831_v31 = vpop.eup %830 }
 0xe3b   :  { %562 = vrot.lane.b32.xlu1 %v831_v31, %s845_s5 }
 0xead   :  { %v563_v32 = vpop.permute.xlu1 %562 }
 0xeae   :  { %v1023_v33 = vmul.f32 %v563_v32, %v545_v41 }
 0xeb0   :  { %567 = vrot.lane.b32.xlu2 %v1023_v33, %s846_s18 }
 0xf0a   :  { %v568_v34 = vpop.permute.xlu2 %567 }
 0xf0b   :  { %775 = vmatmul.msk.f32.vlgmr.msra.gmra.mxu2 %vm138_vm1, %v568_v34 }
 0xf8e   :  { %v588_v35 = vpop.f32.mrf.mxu2 }
 0xf8f   :  { %v591_v37 = vadd.f32 %v588_v35, %v957_v43 }
 0xf91   :  { %v776_v38 = vmul.f32 -1.442695, %v591_v37 }
 0xf93   :  { %832 = vpow2.f32 %v776_v38 }
 0xf99   :  { %v833_v39 = vpop.eup %832 }
 0xf9a   :  { %v595_v42 = vadd.f32 1.0, %v833_v39 }
 0xf9c   :  { %834 = vrcp.f32 %v595_v42  ;;  %v607_v48 = vand.u32 2147483648, %v595_v42  ;;  %v605_v50 = vand.u32 2147483647, %v595_v42  ;;  %vm601_vm12 = vweird.f32 %v595_v42 }
 0xf9e   :  { %v608_v52 = vor.u32 1.1754944e-38, %v607_v48  ;;  %vm606_vm14 = vcmp.eq.f32.partialorder %v605_v50, 8.507059e+37 }
 0xfa2   :  { %v835_v44 = vpop.eup %834 }
 0xfa3   :  { %v597_v46 = vmul.f32 %v835_v44, %v595_v42  ;;  %vm602_vm11 = vweird.f32 %v835_v44 }
 0xfa4   :  { %vm603_vm13 = vmor %vm601_vm12, %vm602_vm11 }
 0xfa5   :  { %v598_v47 = vsub.f32 1.0, %v597_v46 }
 0xfa7   :  { %v599_v49 = vmul.f32 %v835_v44, %v598_v47 }
 0xfa9   :  { %v600_v51 = vadd.f32 %v835_v44, %v599_v49 }
 0xfab   :  { %v604_v53 = vsel %vm603_vm13, %v835_v44, %v600_v51 }
 0xfac   :  { %v609_v54 = vsel %vm606_vm14, %v608_v52, %v604_v53 }
 0xfad   :  { %v611_v43 = vmul.f32 2.0, %v609_v54  ;;  %v613_v58 = vmul.f32 %v609_v54, %v559_v30 }
 0xfaf   :  { %v777_v55 = vadd.f32 -1.0, %v611_v43 }
 0xfb1   :  { %615 = vrot.lane.b32.xlu0 %v777_v55, %s845_s5 }
0x1023   :  { %v616_v56 = vpop.permute.xlu0 %615 }
0x1024   :  { %v618_v57 = vmul.f32 %v616_v56, %v609_v54 }
0x1026   :  { %620 = vrot.lane.b32.xlu1 %v618_v57, %s846_s18 }
0x1098   :  { %v621_v59 = vpop.permute.xlu1 %620 }
0x1099   :  { %v623_v60 = vadd.f32 %v621_v59, %v613_v58 }
0x109b   :  { %836 = vtanh.f32 %v623_v60 }
0x10a1   :  { %v837_v61 = vpop.eup %836 }
0x10a2   :  { %626 = vrot.lane.b32.xlu2 %v837_v61, %s845_s5 }
0x10fc   :  { %v627_v62 = vpop.permute.xlu2 %626 }
0x10fd   :  { %v629_v63 = vmul.f32 %v627_v62, %v609_v54 }
0x10ff   :  { %631 = vrot.lane.b32.xlu0 %v629_v63, %s846_s18 }
0x1171   :  { %v632_v0 = vpop.permute.xlu0 %631 }
0x1172   :  { %778 = vmatmul.msk.f32.vlgmr.msrb.gmra.mxu3 %vm138_vm1, %v632_v0 }
0x11f5   :  { %v652_v1 = vpop.f32.mrf.mxu3 }
0x11f6   :  { %v655_v2 = vadd.f32 %v652_v1, %v960_v45 }
0x11f8   :  { %v779_v3 = vmul.f32 -1.442695, %v655_v2 }
0x11fa   :  { %838 = vpow2.f32 %v779_v3 }
0x1200   :  { %v839_v4 = vpop.eup %838 }
0x1201   :  { %v659_v6 = vadd.f32 1.0, %v839_v4 }
0x1203   :  { %840 = vrcp.f32 %v659_v6  ;;  %v671_v12 = vand.u32 2147483648, %v659_v6  ;;  %v669_v14 = vand.u32 2147483647, %v659_v6  ;;  %vm665_vm0 = vweird.f32 %v659_v6 }
0x1205   :  { %v672_v16 = vor.u32 1.1754944e-38, %v671_v12  ;;  %vm670_vm3 = vcmp.eq.f32.partialorder %v669_v14, 8.507059e+37 }
0x1209   :  { %v841_v8 = vpop.eup %840 }
0x120a   :  { %v661_v10 = vmul.f32 %v841_v8, %v659_v6  ;;  %vm666_vm15 = vweird.f32 %v841_v8 }
0x120b   :  { %vm667_vm2 = vmor %vm665_vm0, %vm666_vm15 }
0x120c   :  { %v662_v11 = vsub.f32 1.0, %v661_v10 }
0x120e   :  { %v663_v13 = vmul.f32 %v841_v8, %v662_v11 }
0x1210   :  { %v664_v15 = vadd.f32 %v841_v8, %v663_v13 }
0x1212   :  { %v668_v17 = vsel %vm667_vm2, %v841_v8, %v664_v15 }
0x1213   :  { %v673_v18 = vsel %vm670_vm3, %v672_v16, %v668_v17 }
0x1214   :  { %v675_v45 = vmul.f32 2.0, %v673_v18  ;;  %v677_v23 = vmul.f32 %v673_v18, %v623_v60 }
0x1216   :  { %v780_v19 = vadd.f32 -1.0, %v675_v45 }
0x1218   :  { %679 = vrot.lane.b32.xlu1 %v780_v19, %s845_s5 }
0x1220   :  { %695 = vrot.lane.b32.xlu1 %v979_v40, %s845_s5 }
0x1228   :  { %705 = vrot.lane.b32.xlu1 %v629_v63, %s847_s19 }
0x128a   :  { %v680_v22 = vpop.permute.xlu1 %679 }
0x128b   :  { %v682_v20 = vmul.f32 %v680_v22, %v673_v18 }
0x128d   :  { %684 = vrot.lane.b32.xlu2 %v682_v20, %s846_s18 }
0x1292   :  { %v696_v21 = vpop.permute.xlu1 %695 }
0x1293   :  { %v708_v32 = vsel %vm138_vm1, %v967_v9, %v696_v21 }
0x1295   :  { %702 = vrot.lane.b32.xlu2 %v1023_v33, %s845_s5 }
0x129a   :  { %v706_v28 = vpop.permute.xlu1 %705 }
0x12e7   :  { %v685_v25 = vpop.permute.xlu2 %684 }
0x12e8   :  { %v687_v41 = vadd.f32 %v685_v25, %v677_v23 }
0x12ea   :  { %842 = vtanh.f32 %v687_v41 }
0x12ef   :  { %v703_v40 = vpop.permute.xlu2 %702 }
0x12f0   :  { %v843_v26 = vpop.eup %842  ;;  %v713_v24 = vsel %vm138_vm1, %v1015_v5, %v703_v40 }
0x12f1   :  { %690 = vrot.lane.b32.xlu0 %v843_v26, %s845_s5  ;;  %v714_v30 = vsel %vm709_vm4, %v713_v24, %v706_v28 }
0x12f9   :  { %698 = vrot.lane.b32.xlu0 %v992_v7, %s847_s19 }
0x1363   :  { %v691_v27 = vpop.permute.xlu0 %690 }
0x1364   :  { %v693_v29 = vmul.f32 %v691_v27, %v673_v18 }
0x1366   :  { %v715_v31 = vsel %vm711_vm5, %v714_v30, %v693_v29 }
0x1367   :  { %717 = vst [vmem:[%s1060_s6 + $0x8] sm:$0xff] %v715_v31 }
0x136b   :  { %v699_v7 = vpop.permute.xlu0 %698 }
0x136c   :  { %v710_v33 = vsel %vm709_vm4, %v708_v32, %v699_v7 }
0x136d   :  { %v712_v34 = vsel %vm711_vm5, %v710_v33, %v1005_v36 }
0x136e   :  { %716 = vst [vmem:[%s1060_s6] sm:$0xff] %v712_v34 }

</bundles_post_ra>
